<compile_context>
chip_gen: v5e
topology: v5e:2x2
jax: 0.10.0
libtpu: 0.0.40
codegen_flags: <defaults>
</compile_context>

<pallas_src>
import jax
import jax.numpy as jnp
from jax.experimental import pallas as pl
from jax.experimental.pallas import tpu as pltpu

HIDDEN = 128
INPUT = 33
ROWS = 64                              # the module hardcodes 64 rows in its loop
N_IP = 8                               # 8 ip-byte tokens  -> 8 * emb(1) = 8 feats
N_PORT = 2                             # 2 port tokens     -> 2 * emb(4) = 8 feats
X_DIM = INPUT - N_IP - 4 * N_PORT      # 17 raw features; 17 + 8 + 8 = 33


def _encoder_kernel(xc_ref, h_ref, w_t_ref, whh_t_ref, b_gh_ref, b_in_ref,
                    out_ref, hid_ref):
    """Batched GRU cell: out[i] = GRUCell(xc[i], h0) for all 64 rows at once.

    Ref shapes (identical for the ungridded and the grid=(B,) paths):
      xc_ref  (64, 33)  f32     w_t_ref  (33, 384) bf16   b_gh_ref (1, 384) f32
      h_ref   (1, 1, 128) f32   whh_t_ref(128,384) f32    b_in_ref (1, 128) f32
      out_ref (64, 128) f32     hid_ref  (1, 1, 128) f32
    Gate layout is PyTorch's [r | z | n]; weights are pre-transposed.
    """
    H = HIDDEN

    # Single input projection: (64,33)@(33,384), bf16 on the MXU, f32 acc.
    gi = jnp.dot(xc_ref[...].astype(jnp.bfloat16), w_t_ref[...],
                 preferred_element_type=jnp.float32)               # (64, 384) f32

    # The initial hidden is identical for every row -> one (1,128)@(128,384)
    # f32 matmul; gate math broadcasts the resulting row.
    h0 = h_ref[0]                                                   # (1, 128) f32
    gh = jnp.dot(h0, whh_t_ref[...],
                 preferred_element_type=jnp.float32) + b_gh_ref[...]  # (1, 384)

    r = jax.nn.sigmoid(gi[:, 0:H] + gh[:, 0:H])                     # (64, 128)
    z = jax.nn.sigmoid(gi[:, H:2 * H] + gh[:, H:2 * H])
    n = jnp.tanh(gi[:, 2 * H:] + b_in_ref[...] + r * gh[:, 2 * H:])
    h_new = (1.0 - z) * n + z * h0                                  # (64, 128) f32

    out_ref[...] = h_new
    hid_ref[0] = h_new[ROWS - 1:ROWS, :]      # self.hidden after the loop (row 63)


@jax.jit
def encoder_forward(x, ip, port, hidden, params):
    """JAX/Pallas equivalent of Encoder.forward (single invocation)."""
    # Embedding lookups + concat: one small fused XLA gather chain (8.4 KB).
    ip_feat = params["ip_emb"][ip]                                   # (64, 8)
    port_feat = params["port_emb"][port].reshape(ROWS, -1)           # (64, 8)
    xc = jnp.concatenate([x, ip_feat, port_feat], axis=1)            # (64, 33)

    vmem = pl.BlockSpec(memory_space=pltpu.MemorySpace.VMEM)
    outputs, new_hidden = pl.pallas_call(
        _encoder_kernel,
        out_shape=(
            jax.ShapeDtypeStruct((ROWS, HIDDEN), jnp.float32),
            jax.ShapeDtypeStruct((1, 1, HIDDEN), jnp.float32),
        ),
        in_specs=[vmem] * 6,
        out_specs=(vmem, vmem),
    )(xc, hidden, params["w_ih_t"], params["w_hh_t"],
      params["b_gh"], params["b_in"])
    return outputs, new_hidden


@jax.jit
def encoder_forward_batched(x, ip, port, hidden, params):
    """B stacked Encoder.forward calls on one grid.

    x (B,64,17) f32, ip (B,64,8) i32, port (B,64,2) i32, hidden (B,1,128) f32.
    Returns outputs (B,64,128) and new hidden (B,1,128).
    grid=(B,) is marked "parallel" so v7x shards it across both TensorCores;
    weights/biases use constant index_maps -> DMA'd once, VMEM-resident.
    """
    B = x.shape[0]
    ip_feat = params["ip_emb"][ip]                                   # (B, 64, 8)
    port_feat = params["port_emb"][port].reshape(B, ROWS, -1)        # (B, 64, 8)
    xc = jnp.concatenate([x, ip_feat, port_feat], axis=2)            # (B, 64, 33)

    outputs, new_hidden = pl.pallas_call(
        _encoder_kernel,
        out_shape=(
            jax.ShapeDtypeStruct((B, ROWS, HIDDEN), jnp.float32),
            jax.ShapeDtypeStruct((B, 1, HIDDEN), jnp.float32),
        ),
        grid=(B,),
        in_specs=[
            pl.BlockSpec((None, ROWS, INPUT), lambda b: (b, 0, 0)),     # xc, per-step
            pl.BlockSpec((1, 1, HIDDEN), lambda b: (b, 0, 0)),          # hidden, per-step
            pl.BlockSpec((INPUT, 3 * HIDDEN), lambda b: (0, 0)),        # weights: resident
            pl.BlockSpec((HIDDEN, 3 * HIDDEN), lambda b: (0, 0)),
            pl.BlockSpec((1, 3 * HIDDEN), lambda b: (0, 0)),
            pl.BlockSpec((1, HIDDEN), lambda b: (0, 0)),
        ],
        out_specs=(
            pl.BlockSpec((None, ROWS, HIDDEN), lambda b: (b, 0, 0)),
            pl.BlockSpec((1, 1, HIDDEN), lambda b: (b, 0, 0)),
        ),
        compiler_params=pltpu.CompilerParams(
            dimension_semantics=("parallel",)),
    )(xc, hidden, params["w_ih_t"], params["w_hh_t"],
      params["b_gh"], params["b_in"])
    return outputs, new_hidden


def init_raw_params(key):
    """Raw parameters in the PyTorch layout (weight_ih_l0: (3H, 33), etc.)."""
    keys = jax.random.split(key, 6)
    bound = 1.0 / jnp.sqrt(jnp.float32(HIDDEN))  # PyTorch GRU default init range
    u = lambda k, shape: jax.random.uniform(
        k, shape, dtype=jnp.float32, minval=-bound, maxval=bound)
    return {
        "w_ih": u(keys[0], (3 * HIDDEN, INPUT)),     # weight_ih_l0, rows [r|z|n]
        "w_hh": u(keys[1], (3 * HIDDEN, HIDDEN)),    # weight_hh_l0
        "b_ih": u(keys[2], (3 * HIDDEN,)),           # bias_ih_l0
        "b_hh": u(keys[3], (3 * HIDDEN,)),           # bias_hh_l0
        "ip_emb": jax.random.normal(keys[4], (256, 1), dtype=jnp.float32),
        "port_emb": jax.random.normal(keys[5], (70000, 4), dtype=jnp.float32),
    }


def prepare_params(raw):
    """One-time prep OUTSIDE the per-call path: transpose, cast, fold biases."""
    H = HIDDEN
    b_ih = raw["b_ih"].astype(jnp.float32)
    b_hh = raw["b_hh"].astype(jnp.float32)
    # Row added to gh: r/z slices carry b_ih+b_hh; n slice carries b_hh only
    # (so n = tanh(gi_n + b_in + r*(gh_n + b_hn)) is preserved).
    b_gh = jnp.concatenate(
        [b_ih[:2 * H] + b_hh[:2 * H], b_hh[2 * H:]]).reshape(1, 3 * H)
    return {
        "w_ih_t": raw["w_ih"].T.astype(jnp.bfloat16),     # (33, 384) bf16
        "w_hh_t": raw["w_hh"].T.astype(jnp.float32),      # (128, 384) f32 (accuracy)
        "b_gh": b_gh,                                     # (1, 384) f32
        "b_in": b_ih[2 * H:].reshape(1, H),               # (1, 128) f32
        "ip_emb": raw["ip_emb"].reshape(-1).astype(jnp.float32),   # (256,)
        "port_emb": raw["port_emb"].astype(jnp.float32),           # (70000, 4)
    }


def _reference_forward(x, ip, port, hidden, raw):
    """Pure-JAX f32 reference mirroring the PyTorch module."""
    ip_feat = raw["ip_emb"][ip].reshape(ROWS, -1)
    port_feat = raw["port_emb"][port].reshape(ROWS, -1)
    xc = jnp.concatenate([x, ip_feat, port_feat], axis=1)         # (64, 33)
    h = jnp.broadcast_to(hidden[0, 0], (ROWS, HIDDEN))
    gi = xc @ raw["w_ih"].T + raw["b_ih"]
    gh = h @ raw["w_hh"].T + raw["b_hh"]
    H = HIDDEN
    r = jax.nn.sigmoid(gi[:, :H] + gh[:, :H])
    z = jax.nn.sigmoid(gi[:, H:2 * H] + gh[:, H:2 * H])
    n = jnp.tanh(gi[:, 2 * H:] + r * gh[:, 2 * H:])
    out = (1.0 - z) * n + z * h
    return out, out[ROWS - 1].reshape(1, 1, HIDDEN)


if __name__ == "__main__":
    key = jax.random.PRNGKey(0)
    k_param, k_x, k_ip, k_port, k_bx, k_bip, k_bport, k_bh = jax.random.split(key, 8)

    raw = init_raw_params(k_param)
    params = prepare_params(raw)

    # ---- single-call path (matches Encoder.forward exactly) ----
    x = jax.random.normal(k_x, (ROWS, X_DIM), dtype=jnp.float32)                  # (64, 17)
    ip = jax.random.randint(k_ip, (ROWS, N_IP), 0, 256, dtype=jnp.int32)          # (64, 8)
    port = jax.random.randint(k_port, (ROWS, N_PORT), 0, 70000, dtype=jnp.int32)  # (64, 2)
    hidden = jnp.zeros((1, 1, HIDDEN), dtype=jnp.float32)                         # init_hidden()

    outputs, new_hidden = encoder_forward(x, ip, port, hidden, params)
    jax.block_until_ready((outputs, new_hidden))

    assert outputs.shape == (ROWS, HIDDEN) and outputs.dtype == jnp.float32
    assert new_hidden.shape == (1, 1, HIDDEN)

    ref_out, ref_hid = _reference_forward(x, ip, port, hidden, raw)
    assert jnp.max(jnp.abs(outputs - ref_out)) < 5e-2
    assert jnp.max(jnp.abs(new_hidden - ref_hid)) < 5e-2

    # ---- batched path (B stacked invocations, grid=(B,) parallel) ----
    B = 2
    xb = jax.random.normal(k_bx, (B, ROWS, X_DIM), dtype=jnp.float32)
    ipb = jax.random.randint(k_bip, (B, ROWS, N_IP), 0, 256, dtype=jnp.int32)
    portb = jax.random.randint(k_bport, (B, ROWS, N_PORT), 0, 70000, dtype=jnp.int32)
    hb = 0.1 * jax.random.normal(k_bh, (B, 1, HIDDEN), dtype=jnp.float32)

    outb, hidb = encoder_forward_batched(xb, ipb, portb, hb, params)
    jax.block_until_ready((outb, hidb))
    assert outb.shape == (B, ROWS, HIDDEN) and hidb.shape == (B, 1, HIDDEN)

    for b in range(B):
        ref_o, ref_h = _reference_forward(
            xb[b], ipb[b], portb[b], hb[b].reshape(1, 1, HIDDEN), raw)
        assert jnp.max(jnp.abs(outb[b] - ref_o)) < 5e-2
        assert jnp.max(jnp.abs(hidb[b].reshape(1, 1, HIDDEN) - ref_h)) < 5e-2

    print("KERNEL_OK")
</pallas_src>

<mosaic_0001>
module attributes {stable_mosaic.version = 11 : i64} {
  func.func @_encoder_kernel(%arg0: memref<64x33xf32, #tpu.memory_space<vmem>>, %arg1: memref<1x1x128xf32, #tpu.memory_space<vmem>>, %arg2: memref<33x384xbf16, #tpu.memory_space<vmem>>, %arg3: memref<128x384xf32, #tpu.memory_space<vmem>>, %arg4: memref<1x384xf32, #tpu.memory_space<vmem>>, %arg5: memref<1x128xf32, #tpu.memory_space<vmem>>, %arg6: memref<64x128xf32, #tpu.memory_space<vmem>>, %arg7: memref<1x1x128xf32, #tpu.memory_space<vmem>>) attributes {dimension_semantics = [], scalar_prefetch = 0 : i64, scratch_operands = 0 : i64, tpu.core_type = #tpu.core_type<tc>} {
    %c0 = arith.constant 0 : index
    %c0_0 = arith.constant 0 : index
    %0 = vector.load %arg0[%c0, %c0_0] : memref<64x33xf32, #tpu.memory_space<vmem>>, vector<64x33xf32>
    %1 = arith.truncf %0 : vector<64x33xf32> to vector<64x33xbf16>
    %c0_1 = arith.constant 0 : index
    %c0_2 = arith.constant 0 : index
    %2 = vector.load %arg2[%c0_1, %c0_2] : memref<33x384xbf16, #tpu.memory_space<vmem>>, vector<33x384xbf16>
    %cst = arith.constant dense<0.000000e+00> : vector<64x384xf32>
    %3 = tpu.matmul %1, %2, %cst {dimension_numbers = #tpu.dot_dimension_numbers<[1], [0], [0], [1], [0, 0, 1, 1], [], []>} : vector<64x33xbf16>, vector<33x384xbf16>, vector<64x384xf32> -> vector<64x384xf32>
    %c0_3 = arith.constant 0 : index
    %c0_4 = arith.constant 0 : index
    %c0_5 = arith.constant 0 : index
    %4 = vector.load %arg1[%c0_3, %c0_4, %c0_5] : memref<1x1x128xf32, #tpu.memory_space<vmem>>, vector<1x1x128xf32>
    %5 = vector.shape_cast %4 : vector<1x1x128xf32> to vector<1x128xf32>
    %c0_6 = arith.constant 0 : index
    %c0_7 = arith.constant 0 : index
    %6 = vector.load %arg3[%c0_6, %c0_7] : memref<128x384xf32, #tpu.memory_space<vmem>>, vector<128x384xf32>
    %cst_8 = arith.constant dense<0.000000e+00> : vector<1x384xf32>
    %7 = tpu.matmul %5, %6, %cst_8 {dimension_numbers = #tpu.dot_dimension_numbers<[1], [0], [0], [1], [0, 0, 1, 1], [], []>} : vector<1x128xf32>, vector<128x384xf32>, vector<1x384xf32> -> vector<1x384xf32>
    %c0_9 = arith.constant 0 : index
    %c0_10 = arith.constant 0 : index
    %8 = vector.load %arg4[%c0_9, %c0_10] : memref<1x384xf32, #tpu.memory_space<vmem>>, vector<1x384xf32>
    %9 = arith.addf %7, %8 : vector<1x384xf32>
    %10 = vector.extract_strided_slice %3 {offsets = [0, 0], sizes = [64, 128], strides = [1, 1]} : vector<64x384xf32> to vector<64x128xf32>
    %11 = vector.extract_strided_slice %9 {offsets = [0, 0], sizes = [1, 128], strides = [1, 1]} : vector<1x384xf32> to vector<1x128xf32>
    %12 = vector.broadcast %11 : vector<1x128xf32> to vector<64x128xf32>
    %13 = arith.addf %10, %12 : vector<64x128xf32>
    %14 = arith.negf %13 : vector<64x128xf32>
    %15 = math.exp %14 : vector<64x128xf32>
    %cst_11 = arith.constant 1.000000e+00 : f32
    %16 = vector.broadcast %cst_11 : f32 to vector<64x128xf32>
    %17 = arith.addf %16, %15 : vector<64x128xf32>
    %18 = arith.divf %16, %17 : vector<64x128xf32>
    %19 = vector.extract_strided_slice %3 {offsets = [0, 128], sizes = [64, 128], strides = [1, 1]} : vector<64x384xf32> to vector<64x128xf32>
    %20 = vector.extract_strided_slice %9 {offsets = [0, 128], sizes = [1, 128], strides = [1, 1]} : vector<1x384xf32> to vector<1x128xf32>
    %21 = vector.broadcast %20 : vector<1x128xf32> to vector<64x128xf32>
    %22 = arith.addf %19, %21 : vector<64x128xf32>
    %23 = arith.negf %22 : vector<64x128xf32>
    %24 = math.exp %23 : vector<64x128xf32>
    %cst_12 = arith.constant 1.000000e+00 : f32
    %25 = vector.broadcast %cst_12 : f32 to vector<64x128xf32>
    %26 = arith.addf %25, %24 : vector<64x128xf32>
    %27 = arith.divf %25, %26 : vector<64x128xf32>
    %28 = vector.extract_strided_slice %3 {offsets = [0, 256], sizes = [64, 128], strides = [1, 1]} : vector<64x384xf32> to vector<64x128xf32>
    %c0_13 = arith.constant 0 : index
    %c0_14 = arith.constant 0 : index
    %29 = vector.load %arg5[%c0_13, %c0_14] : memref<1x128xf32, #tpu.memory_space<vmem>>, vector<1x128xf32>
    %30 = vector.broadcast %29 : vector<1x128xf32> to vector<64x128xf32>
    %31 = arith.addf %28, %30 : vector<64x128xf32>
    %32 = vector.extract_strided_slice %9 {offsets = [0, 256], sizes = [1, 128], strides = [1, 1]} : vector<1x384xf32> to vector<1x128xf32>
    %33 = vector.broadcast %32 : vector<1x128xf32> to vector<64x128xf32>
    %34 = arith.mulf %18, %33 : vector<64x128xf32>
    %35 = arith.addf %31, %34 : vector<64x128xf32>
    %36 = math.tanh %35 : vector<64x128xf32>
    %cst_15 = arith.constant 1.000000e+00 : f32
    %37 = vector.broadcast %cst_15 : f32 to vector<64x128xf32>
    %38 = arith.subf %37, %27 : vector<64x128xf32>
    %39 = arith.mulf %38, %36 : vector<64x128xf32>
    %40 = vector.broadcast %5 : vector<1x128xf32> to vector<64x128xf32>
    %41 = arith.mulf %27, %40 : vector<64x128xf32>
    %42 = arith.addf %39, %41 : vector<64x128xf32>
    %c0_16 = arith.constant 0 : index
    %c0_17 = arith.constant 0 : index
    %43 = vector.load %arg6[%c0_16, %c0_17] : memref<64x128xf32, #tpu.memory_space<vmem>>, vector<64x128xf32>
    tpu.vector_store %arg6[%c0_16, %c0_17], %42 {strides = array<i32>} : memref<64x128xf32, #tpu.memory_space<vmem>>, vector<64x128xf32>,
    %44 = vector.extract_strided_slice %42 {offsets = [63, 0], sizes = [1, 128], strides = [1, 1]} : vector<64x128xf32> to vector<1x128xf32>
    %c0_18 = arith.constant 0 : index
    %c0_19 = arith.constant 0 : index
    %c0_20 = arith.constant 0 : index
    %45 = vector.load %arg7[%c0_18, %c0_19, %c0_20] : memref<1x1x128xf32, #tpu.memory_space<vmem>>, vector<1x1x128xf32>
    %46 = vector.shape_cast %45 : vector<1x1x128xf32> to vector<1x128xf32>
    %47 = vector.shape_cast %44 : vector<1x128xf32> to vector<1x1x128xf32>
    tpu.vector_store %arg7[%c0_18, %c0_19, %c0_20], %47 {strides = array<i32>} : memref<1x1x128xf32, #tpu.memory_space<vmem>>, vector<1x1x128xf32>,
    return
  }
}

</mosaic_0001>

<bundles_post_ra>
// kernel: encoder_forward.1
= control target key start
LH: loop header
LB: loop body
LE: loop exit
PB: predicated region body
PF: predicated region fallthrough
CT: control target
= control target key end

     0   :  { %13 = vsyncpa [#allocation3], 0  ;;  %vm103_vm0 = vcmask 1040384   ;;  %v953_v6 = vmov 0   ;;  %vm90_vm1 = vcmask 269312   ;;  %s1805_s0 = inlined_call_operand.vmem [shape: f32[64,33], index: 0, kind: input, shape index: {}]   ;;  %s1806_s1 = inlined_call_operand.vmem [shape: f32[1,1,128], index: 1, kind: input, shape index: {}]   ;;  %s1807_s2 = inlined_call_operand.vmem [shape: bf16[33,384], index: 2, kind: input, shape index: {}]   ;;  %s1808_s3 = inlined_call_operand.vmem [shape: f32[128,384], index: 3, kind: input, shape index: {}]   ;;  %s1809_s4 = inlined_call_operand.vmem [shape: f32[1,384], index: 4, kind: input, shape index: {}]   ;;  %s1810_s5 = inlined_call_operand.vmem [shape: f32[1,128], index: 5, kind: input, shape index: {}]   ;;  %s1811_s6 = inlined_call_operand.hbm [shape: f32[64,128], index: 6, kind: output, shape index: {0}]   ;;  %s1812_s7 = inlined_call_operand.hbm [shape: f32[1,1,128], index: 7, kind: output, shape index: {1}]  }
   0x1   :  { %v248_v0 = vld [vmem:[%s1808_s3 + $0x168] sm:$0xff]  ;;  %v245_v1 = vld [vmem:[%s1808_s3 + $0x150] sm:$0xff]  ;;  %v242_v3 = vld [vmem:[%s1808_s3 + $0x138] sm:$0xff]  ;;  %v105_v7 = vsel %vm103_vm0, 65535, %v953_v6 }
   0x2   :  { %259 = vmatpush.msra.mxu3 %v248_v0  ;;  %v48_v2 = vld [vmem:[%s1807_s2 + $0x30] sm:$0x11]  ;;  %v239_v10 = vld [vmem:[%s1808_s3 + $0x120] sm:$0xff]  ;;  %v770_v11 = vld [vmem:[%s1807_s2 + $0x18] sm:$0xf] }
   0x3   :  { %v72_v4 = vunpack.c.l.b16 %v48_v2  ;;  %v73_v5 = vunpack.c.h.b16 %v48_v2  ;;  %v812_v12 = vld [vmem:[%s1807_s2 + $0x20] sm:$0xf0]  ;;  %v811_v13 = vld [vmem:[%s1807_s2 + $0x1c] sm:$0xf]  ;;  %v772_v14 = vld [vmem:[%s1807_s2 + $0x24] sm:$0xf0] }
   0x4   :  { %260 = vmatpush.msra.mxu3 %v245_v1  ;;  %v236_v17 = vld [vmem:[%s1808_s3 + $0x108] sm:$0xff]  ;;  %v49_v18 = vld [vmem:[%s1807_s2 + $0x38] sm:$0x1]  ;;  %v771_v19 = vor.u32 %v812_v12, %v770_v11  ;;  %v775_v20 = vor.u32 %v811_v13, %v772_v14  ;;  %v233_v21 = vld [vmem:[%s1808_s3 + $0xf0] sm:$0xff] }
   0x5   :  { %v81_v8 = vpack.c.b16 %v72_v4, %v72_v4  ;;  %v82_v9 = vpack.c.b16 %v73_v5, %v73_v5  ;;  %v758_v22 = vld [vmem:[%s1807_s2] sm:$0xf]  ;;  %v74_v23 = vunpack.c.l.b16 %v49_v18  ;;  %v809_v24 = vld [vmem:[%s1807_s2 + $0x8] sm:$0xf0]  ;;  %v808_v25 = vld [vmem:[%s1807_s2 + $0x4] sm:$0xf] }
   0x6   :  { %261 = vmatpush.msra.mxu3 %v242_v3  ;;  %v760_v26 = vld [vmem:[%s1807_s2 + $0xc] sm:$0xf0]  ;;  %v230_v27 = vld [vmem:[%s1808_s3 + $0xd8] sm:$0xff]  ;;  %v778_v29 = vld [vmem:[%s1807_s2 + $0x20] sm:$0xf]  ;;  %v759_v31 = vor.u32 %v809_v24, %v758_v22 }
   0x7   :  { %v107_v15 = vand.u32 %v105_v7, %v81_v8  ;;  %v110_v16 = vand.u32 %v105_v7, %v82_v9  ;;  %v83_v28 = vpack.c.b16 %v74_v23, %v74_v23  ;;  %v813_v30 = vld [vmem:[%s1807_s2 + $0x28] sm:$0xf0]  ;;  %v763_v32 = vor.u32 %v808_v25, %v760_v26  ;;  %v227_v33 = vld [vmem:[%s1808_s3 + $0xc0] sm:$0xff]  ;;  %v250_v39 = vld [vmem:[%s1808_s3 + $0x178] sm:$0xff] }
   0x8   :  { %262 = vmatpush.msra.mxu3 %v239_v10  ;;  %v28_v34 = vld [vmem:[%s1805_s0] sm:$0xff]  ;;  %v29_v35 = vld [vmem:[%s1805_s0 + $0x8] sm:$0xff]  ;;  %v779_v38 = vor.u32 %v813_v30, %v778_v29  ;;  %v810_v42 = vld [vmem:[%s1807_s2 + $0x10] sm:$0xf0] }
   0x9   :  { %120 = vmatpush.bf16.msra.mxu0 %v107_v15  ;;  %149 = vmatpush.bf16.msra.mxu1 %v110_v16  ;;  %v113_v36 = vand.u32 %v105_v7, %v83_v28  ;;  %v224_v37 = vld [vmem:[%s1808_s3 + $0xa8] sm:$0xff]  ;;  %v36_v40 = vpack.c.bf16 %v29_v35, %v28_v34 }
   0xa   :  { %263 = vmatpush.msra.mxu3 %v236_v17  ;;  %v766_v41 = vld [vmem:[%s1807_s2 + $0x8] sm:$0xf] }
   0xb   :  { %178 = vmatpush.bf16.msra.mxu2 %v113_v36 }
   0xc   :  { %264 = vmatpush.msra.mxu3 %v233_v21 }
   0xd   :  { %121 = vmatpush.bf16.msra.mxu0 %v771_v19  ;;  %150 = vmatpush.bf16.msra.mxu1 %v775_v20 }
   0xe   :  { %265 = vmatpush.msra.mxu3 %v230_v27 }
  0x10   :  { %266 = vmatpush.msra.mxu3 %v227_v33 }
  0x11   :  { %122 = vmatpush.bf16.msra.mxu0 %v759_v31  ;;  %151 = vmatpush.bf16.msra.mxu1 %v763_v32 }
  0x12   :  { %14 = vsyncpa [#allocation5], 0  ;;  %267 = vmatpush.msra.mxu3 %v224_v37  ;;  %v221_v43 = vld [vmem:[%s1808_s3 + $0x90] sm:$0xff]  ;;  %v247_v44 = vld [vmem:[%s1808_s3 + $0x160] sm:$0xff]  ;;  %179 = vmatpush.bf16.msra.mxu2 %v779_v38  ;;  %v767_v45 = vor.u32 %v810_v42, %v766_v41  ;;  %s742_s29 = sshll.u32 %s1812_s7, 4  ;;  %s955_s7 = smov [#allocation2]   ;;  %s743_s29 = int_to_ptr.hbm [resolvable:$true] %s742_s29 }
  0x13   :  { %v218_v46 = vld [vmem:[%s1808_s3 + $0x78] sm:$0xff]  ;;  %v244_v47 = vld [vmem:[%s1808_s3 + $0x148] sm:$0xff]  ;;  %v215_v48 = vld [vmem:[%s1808_s3 + $0x60] sm:$0xff]  ;;  %s726_s30 = sshll.u32 %s955_s7, 4  ;;  %s728_s10 = sshll.u32 %s1811_s6, 4  ;;  %s727_s30 = int_to_ptr.vmem [resolvable:$true] %s726_s30  ;;  %s729_s10 = int_to_ptr.hbm [resolvable:$true] %s728_s10 }
  0x14   :  { %780 = vmatmul.msk.bf16.vlgmr.msra.gmra.mxu0 %vm90_vm1, %v36_v40  ;;  %784 = vmatmul.msk.bf16.vlgmr.msra.gmra.mxu1 %vm90_vm1, %v36_v40  ;;  %v241_v49 = vld [vmem:[%s1808_s3 + $0x130] sm:$0xff]  ;;  %v212_v50 = vld [vmem:[%s1808_s3 + $0x48] sm:$0xff]  ;;  %v238_v51 = vld [vmem:[%s1808_s3 + $0x118] sm:$0xff]  ;;  %s956_s2 = smov 128   ;;  %s957_s11 = smov 8  }
  0x15   :  { %299 = vmatpush.msrb.mxu0 %v250_v39  ;;  %268 = vmatpush.msra.mxu3 %v221_v43  ;;  %v209_v52 = vld [vmem:[%s1808_s3 + $0x30] sm:$0xff]  ;;  %v235_v53 = vld [vmem:[%s1808_s3 + $0x100] sm:$0xff]  ;;  %v206_v54 = vld [vmem:[%s1808_s3 + $0x18] sm:$0xff] }
  0x16   :  { %180 = vmatpush.bf16.msra.mxu2 %v767_v45  ;;  %v30_v55 = vld [vmem:[%s1805_s0 + $0x10] sm:$0xff]  ;;  %v31_v56 = vld [vmem:[%s1805_s0 + $0x18] sm:$0xff]  ;;  %v203_v57 = vld [vmem:[%s1808_s3] sm:$0xff] }
  0x17   :  { %300 = vmatpush.msrb.mxu0 %v247_v44  ;;  %269 = vmatpush.msra.mxu3 %v218_v46  ;;  %v1124_v58 = vld [vmem:[%s1806_s1] sm:$0x1]  ;;  %v232_v59 = vld [vmem:[%s1808_s3 + $0xe8] sm:$0xff]  ;;  %v249_v60 = vld [vmem:[%s1808_s3 + $0x170] sm:$0xff]  ;;  %v37_v61 = vpack.c.bf16 %v31_v56, %v30_v55 }
  0x18   :  { %v246_v62 = vld [vmem:[%s1808_s3 + $0x158] sm:$0xff]  ;;  %v229_v63 = vld [vmem:[%s1808_s3 + $0xd0] sm:$0xff]  ;;  %v243_v0 = vld [vmem:[%s1808_s3 + $0x140] sm:$0xff] }
  0x19   :  { %301 = vmatpush.msrb.mxu0 %v244_v47  ;;  %270 = vmatpush.msra.mxu3 %v215_v48  ;;  %v226_v1 = vld [vmem:[%s1808_s3 + $0xb8] sm:$0xff]  ;;  %v223_v2 = vld [vmem:[%s1808_s3 + $0xa0] sm:$0xff]  ;;  %v240_v3 = vld [vmem:[%s1808_s3 + $0x128] sm:$0xff] }
  0x1a   :  { %788 = vmatmul.msk.bf16.vlgmr.msra.gmra.mxu2 %vm90_vm1, %v36_v40  ;;  %v220_v4 = vld [vmem:[%s1808_s3 + $0x88] sm:$0xff]  ;;  %v237_v5 = vld [vmem:[%s1808_s3 + $0x110] sm:$0xff]  ;;  %v234_v7 = vld [vmem:[%s1808_s3 + $0xf8] sm:$0xff] }
  0x1b   :  { %302 = vmatpush.msrb.mxu0 %v241_v49  ;;  %271 = vmatpush.msra.mxu3 %v212_v50  ;;  %v217_v6 = vld [vmem:[%s1808_s3 + $0x70] sm:$0xff]  ;;  %v214_v8 = vld [vmem:[%s1808_s3 + $0x58] sm:$0xff]  ;;  %v231_v9 = vld [vmem:[%s1808_s3 + $0xe0] sm:$0xff] }
  0x1c   :  { %v211_v10 = vld [vmem:[%s1808_s3 + $0x40] sm:$0xff]  ;;  %v33_v12 = vld [vmem:[%s1805_s0 + $0x28] sm:$0xff]  ;;  %v225_v15 = vld [vmem:[%s1808_s3 + $0xb0] sm:$0xff] }
  0x1d   :  { %303 = vmatpush.msrb.mxu0 %v238_v51  ;;  %272 = vmatpush.msra.mxu3 %v209_v52  ;;  %v32_v11 = vld [vmem:[%s1805_s0 + $0x20] sm:$0xff]  ;;  %v228_v13 = vld [vmem:[%s1808_s3 + $0xc8] sm:$0xff]  ;;  %v205_v17 = vld [vmem:[%s1808_s3 + $0x10] sm:$0xff] }
  0x1e   :  { %v208_v14 = vld [vmem:[%s1808_s3 + $0x28] sm:$0xff]  ;;  %v38_v16 = vpack.c.bf16 %v33_v12, %v32_v11  ;;  %v222_v18 = vld [vmem:[%s1808_s3 + $0x98] sm:$0xff]  ;;  %v219_v19 = vld [vmem:[%s1808_s3 + $0x80] sm:$0xff] }
  0x1f   :  { %304 = vmatpush.msrb.mxu0 %v235_v53  ;;  %273 = vmatpush.msra.mxu3 %v206_v54  ;;  %v216_v20 = vld [vmem:[%s1808_s3 + $0x68] sm:$0xff]  ;;  %v213_v21 = vld [vmem:[%s1808_s3 + $0x50] sm:$0xff]  ;;  %v210_v22 = vld [vmem:[%s1808_s3 + $0x38] sm:$0xff] }
  0x20   :  { %v207_v23 = vld [vmem:[%s1808_s3 + $0x20] sm:$0xff]  ;;  %v34_v24 = vld [vmem:[%s1805_s0 + $0x30] sm:$0xff]  ;;  %v35_v25 = vld [vmem:[%s1805_s0 + $0x38] sm:$0xff] }
  0x21   :  { %305 = vmatpush.msrb.mxu0 %v232_v59  ;;  %274 = vmatpush.msra.mxu3 %v203_v57  ;;  %v204_v26 = vld [vmem:[%s1808_s3 + $0x8] sm:$0xff]  ;;  %v39_v27 = vpack.c.bf16 %v35_v25, %v34_v24  ;;  %v1235_v33 = vld [vmem:[%s1809_s4] sm:$0x7] }
  0x22   :  { %275 = vmatmul.f32.vlgmr.msra.gmra.mxu3 %v1124_v58  ;;  %v253_v36 = vperm.slane %v1235_v33, 0 }
  0x23   :  { %279 = vmatpush.msrb.mxu3 %v249_v60  ;;  %306 = vmatpush.msrb.mxu0 %v229_v63 }
  0x24   :  { %781 = vmatmul.msk.bf16.gmra.mxu0 %vm90_vm1, %v37_v61  ;;  %785 = vmatmul.msk.bf16.gmra.mxu1 %vm90_vm1, %v37_v61 }
  0x25   :  { %280 = vmatpush.msrb.mxu3 %v246_v62  ;;  %307 = vmatpush.msrb.mxu0 %v226_v1 }
  0x27   :  { %281 = vmatpush.msrb.mxu3 %v243_v0  ;;  %308 = vmatpush.msrb.mxu0 %v223_v2  ;;  %v1262_v0 = vld [vmem:[%s1810_s5] ss:$0 sm:$0xff] }
  0x29   :  { %282 = vmatpush.msrb.mxu3 %v240_v3  ;;  %309 = vmatpush.msrb.mxu0 %v220_v4 }
  0x2a   :  { %789 = vmatmul.msk.bf16.gmra.mxu2 %vm90_vm1, %v37_v61 }
  0x2b   :  { %283 = vmatpush.msrb.mxu3 %v237_v5  ;;  %310 = vmatpush.msrb.mxu0 %v217_v6 }
  0x2d   :  { %284 = vmatpush.msrb.mxu3 %v234_v7  ;;  %311 = vmatpush.msrb.mxu0 %v214_v8 }
  0x2f   :  { %285 = vmatpush.msrb.mxu3 %v231_v9  ;;  %312 = vmatpush.msrb.mxu0 %v211_v10 }
  0x31   :  { %286 = vmatpush.msrb.mxu3 %v228_v13  ;;  %313 = vmatpush.msrb.mxu0 %v208_v14 }
  0x33   :  { %287 = vmatpush.msrb.mxu3 %v225_v15  ;;  %314 = vmatpush.msrb.mxu0 %v205_v17  ;;  %v254_v17 = vperm.slane %v1235_v33, 1 }
  0x34   :  { %782 = vmatmul.msk.bf16.gmra.mxu0 %vm90_vm1, %v38_v16  ;;  %786 = vmatmul.msk.bf16.gmra.mxu1 %vm90_vm1, %v38_v16 }
  0x35   :  { %288 = vmatpush.msrb.mxu3 %v222_v18 }
  0x37   :  { %289 = vmatpush.msrb.mxu3 %v219_v19 }
  0x39   :  { %290 = vmatpush.msrb.mxu3 %v216_v20 }
  0x3a   :  { %790 = vmatmul.msk.bf16.gmra.mxu2 %vm90_vm1, %v38_v16 }
  0x3b   :  { %291 = vmatpush.msrb.mxu3 %v213_v21 }
  0x3d   :  { %292 = vmatpush.msrb.mxu3 %v210_v22  ;;  %v255_v22 = vperm.slane %v1235_v33, 2 }
  0x3f   :  { %293 = vmatpush.msrb.mxu3 %v207_v23 }
  0x41   :  { %294 = vmatpush.msrb.mxu3 %v204_v26 }
  0x42   :  { %295 = vmatmul.f32.vlgmr.msrb.gmra.mxu3 %v1124_v58 }
  0x44   :  { %783 = vmatmul.msk.bf16.gmra.mxu0 %vm90_vm1, %v39_v27  ;;  %787 = vmatmul.msk.bf16.gmra.mxu1 %vm90_vm1, %v39_v27 }
  0x4a   :  { %791 = vmatmul.msk.bf16.gmra.mxu2 %vm90_vm1, %v39_v27 }
  0x54   :  { %315 = vmatmul.f32.vlgmr.msrb.gmra.mxu0 %v1124_v58 }
  0x91   :  { %v124_v28 = vpop.f32.mrf.mxu0  ;;  %v1228_v29 = vpop.f32.mrf.mxu1 }
  0x99   :  { %v126_v30 = vpop.f32.mrf.mxu0  ;;  %v1230_v31 = vpop.f32.mrf.mxu1 }
  0x9d   :  { %v182_v32 = vpop.f32.mrf.mxu2 }
  0x9e   :  { %v1272_v6 = vadd.f32 %v1262_v0, %v182_v32 }
  0xa1   :  { %v129_v34 = vpop.f32.mrf.mxu0  ;;  %v1237_v35 = vpop.f32.mrf.mxu1 }
  0xa5   :  { %v276_v37 = vpop.f32.mrf.mxu3  ;;  %v184_v38 = vpop.f32.mrf.mxu2 }
  0xa6   :  { %v277_v39 = vadd.f32 %v276_v37, %v253_v36  ;;  %v1275_v7 = vadd.f32 %v1262_v0, %v184_v38 }
  0xa8   :  { %v1240_v40 = vperm.slane %v277_v39, 0 }
  0xa9   :  { %v131_v41 = vpop.f32.mrf.mxu0  ;;  %v1242_v42 = vpop.f32.mrf.mxu1 }
  0xaa   :  { %v320_v43 = vadd.f32 %v1240_v40, %v124_v28  ;;  %v321_v44 = vadd.f32 %v1240_v40, %v126_v30  ;;  %v322_v45 = vadd.f32 %v1240_v40, %v129_v34  ;;  %v323_v46 = vadd.f32 %v1240_v40, %v131_v41 }
  0xac   :  { %v792_v47 = vmul.f32 -1.442695, %v320_v43  ;;  %v793_v48 = vmul.f32 -1.442695, %v321_v44  ;;  %v794_v49 = vmul.f32 -1.442695, %v322_v45 }
  0xad   :  { %v795_v50 = vmul.f32 -1.442695, %v323_v46  ;;  %v187_v51 = vpop.f32.mrf.mxu2 }
  0xae   :  { %821 = vpow2.f32 %v792_v47  ;;  %v1287_v16 = vadd.f32 %v1262_v0, %v187_v51 }
  0xaf   :  { %823 = vpow2.f32 %v793_v48 }
  0xb0   :  { %825 = vpow2.f32 %v794_v49 }
  0xb1   :  { %827 = vpow2.f32 %v795_v50  ;;  %v134_v52 = vpop.f32.mrf.mxu0  ;;  %v1248_v53 = vpop.f32.mrf.mxu1 }
  0xb2   :  { %v324_v54 = vadd.f32 %v1240_v40, %v134_v52 }
  0xb4   :  { %v822_v55 = vpop.eup %821  ;;  %v796_v56 = vmul.f32 -1.442695, %v324_v54 }
  0xb5   :  { %v824_v57 = vpop.eup %823  ;;  %v1251_v58 = vadd.f32 1.0, %v822_v55  ;;  %v189_v59 = vpop.f32.mrf.mxu2 }
  0xb6   :  { %v826_v60 = vpop.eup %825  ;;  %v1253_v61 = vadd.f32 1.0, %v824_v57  ;;  %829 = vpow2.f32 %v796_v56  ;;  %v1294_v19 = vadd.f32 %v1262_v0, %v189_v59 }
  0xb7   :  { %v828_v62 = vpop.eup %827  ;;  %831 = vrcp.f32 %v1251_v58  ;;  %v1256_v63 = vadd.f32 1.0, %v826_v60  ;;  %v369_v12 = vand.u32 2147483647, %v1251_v58  ;;  %v371_v13 = vand.u32 2147483648, %v1251_v58 }
  0xb8   :  { %833 = vrcp.f32 %v1253_v61  ;;  %v1264_v1 = vadd.f32 1.0, %v828_v62  ;;  %vm365_vm2 = vweird.f32 %v1251_v58  ;;  %v386_v20 = vand.u32 2147483648, %v1253_v61 }
  0xb9   :  { %v136_v2 = vpop.f32.mrf.mxu0  ;;  %v1266_v3 = vpop.f32.mrf.mxu1  ;;  %v384_v24 = vand.u32 2147483647, %v1253_v61  ;;  %vm1306_vm4 = vcmp.eq.f32.partialorder %v369_v12, 8.507059e+37  ;;  %v372_v30 = vor.u32 1.1754944e-38, %v371_v13  ;;  %v399_v39 = vand.u32 2147483647, %v1256_v63 }
  0xba   :  { %835 = vrcp.f32 %v1264_v1  ;;  %v325_v4 = vadd.f32 %v1240_v40, %v136_v2  ;;  %v416_v15 = vand.u32 2147483648, %v1264_v1  ;;  %vm410_vm3 = vweird.f32 %v1264_v1 }
  0xbb   :  { %837 = vrcp.f32 %v1256_v63  ;;  %v414_v26 = vand.u32 2147483647, %v1264_v1  ;;  %v1322_v44 = vor.u32 1.1754944e-38, %v386_v20  ;;  %v401_v45 = vand.u32 2147483648, %v1256_v63 }
  0xbc   :  { %v830_v5 = vpop.eup %829  ;;  %v797_v10 = vmul.f32 -1.442695, %v325_v4  ;;  %v1314_v36 = vor.u32 1.1754944e-38, %v416_v15  ;;  %vm380_vm11 = vweird.f32 %v1253_v61  ;;  %vm395_vm15 = vweird.f32 %v1256_v63 }
  0xbd   :  { %v1277_v8 = vpop.eup %831  ;;  %v1279_v9 = vadd.f32 1.0, %v830_v5  ;;  %v192_v11 = vpop.f32.mrf.mxu2  ;;  %vm1333_vm6 = vcmp.eq.f32.partialorder %v414_v26, 8.507059e+37  ;;  %v1366_v15 = vor.u32 1.1754944e-38, %v401_v45  ;;  %vm1413_vm1 = vcmp.eq.f32.partialorder %v384_v24, 8.507059e+37 }
  0xbe   :  { %v1283_v14 = vpop.eup %833  ;;  %v361_v18 = vmul.f32 %v1277_v8, %v1251_v58  ;;  %vm366_vm5 = vweird.f32 %v1277_v8  ;;  %v1327_v48 = vadd.f32 %v1262_v0, %v192_v11 }
  0xbf   :  { %839 = vrcp.f32 %v1279_v9  ;;  %v376_v32 = vmul.f32 %v1283_v14, %v1253_v61  ;;  %v431_v46 = vand.u32 2147483648, %v1279_v9  ;;  %vm425_vm7 = vweird.f32 %v1279_v9  ;;  %vm1349_vm8 = vmor %vm365_vm2, %vm366_vm5 }
  0xc0   :  { %v1298_v21 = vpop.eup %835  ;;  %841 = vpow2.f32 %v797_v10  ;;  %v362_v23 = vsub.f32 1.0, %v361_v18  ;;  %v429_v54 = vand.u32 2147483647, %v1279_v9  ;;  %vm381_vm9 = vweird.f32 %v1283_v14 }
  0xc1   :  { %v406_v25 = vmul.f32 %v1298_v21, %v1264_v1  ;;  %v139_v27 = vpop.f32.mrf.mxu0  ;;  %v1312_v34 = vpop.eup %837  ;;  %v377_v56 = vsub.f32 1.0, %v376_v32  ;;  %vm411_vm10 = vweird.f32 %v1298_v21  ;;  %v1361_v13 = vor.u32 1.1754944e-38, %v431_v46 }
  0xc2   :  { %v326_v37 = vadd.f32 %v1240_v40, %v139_v27  ;;  %v363_v38 = vmul.f32 %v1277_v8, %v362_v23  ;;  %v1319_v43 = vpop.f32.mrf.mxu1  ;;  %v1341_v57 = vmul.f32 %v1312_v34, %v1256_v63  ;;  %vm396_vm13 = vweird.f32 %v1312_v34  ;;  %vm1377_vm14 = vmor %vm410_vm3, %vm411_vm10 }
  0xc3   :  { %v407_v41 = vsub.f32 1.0, %v406_v25  ;;  %v378_v18 = vmul.f32 %v1283_v14, %v377_v56  ;;  %vm1402_vm0 = vcmp.eq.f32.partialorder %v429_v54, 8.507059e+37 }
  0xc4   :  { %v798_v47 = vmul.f32 -1.442695, %v326_v37  ;;  %v364_v49 = vadd.f32 %v1277_v8, %v363_v38  ;;  %v392_v20 = vsub.f32 1.0, %v1341_v57 }
  0xc5   :  { %v1330_v50 = vpop.eup %839  ;;  %v408_v51 = vmul.f32 %v1298_v21, %v407_v41  ;;  %v296_v55 = vpop.f32.mrf.mxu3 }
  0xc6   :  { %v842_v59 = vpop.eup %841  ;;  %v421_v60 = vmul.f32 %v1330_v50, %v1279_v9  ;;  %843 = vpow2.f32 %v798_v47  ;;  %v297_v62 = vadd.f32 %v296_v55, %v254_v17  ;;  %v194_v10 = vpop.f32.mrf.mxu2  ;;  %v368_v11 = vsel %vm1349_vm8, %v1277_v8, %v364_v49  ;;  %vm1471_vm8 = vmor %vm395_vm15, %vm396_vm13 }
  0xc7   :  { %v409_v4 = vadd.f32 %v1298_v21, %v408_v51  ;;  %v1356_v5 = vadd.f32 1.0, %v842_v59  ;;  %vm426_vm12 = vweird.f32 %v1330_v50  ;;  %v1385_v26 = vadd.f32 %v1262_v0, %v194_v10 }
  0xc8   :  { %v422_v12 = vsub.f32 1.0, %v421_v60  ;;  %v1363_v58 = vperm.slane %v297_v62, 0  ;;  %v1389_v27 = vsel %vm1306_vm4, %v372_v30, %v368_v11  ;;  %vm1429_vm2 = vmor %vm425_vm7, %vm426_vm12  ;;  %v379_v51 = vadd.f32 %v1283_v14, %v378_v18 }
  0xc9   :  { %845 = vrcp.f32 %v1356_v5  ;;  %v141_v17 = vpop.f32.mrf.mxu0  ;;  %v413_v1 = vsel %vm1377_vm14, %v1298_v21, %v409_v4  ;;  %v444_v21 = vand.u32 2147483647, %v1356_v5  ;;  %vm440_vm3 = vweird.f32 %v1356_v5 }
  0xca   :  { %v423_v23 = vmul.f32 %v1330_v50, %v422_v12  ;;  %v481_v25 = vadd.f32 %v1363_v58, %v1228_v29  ;;  %v482_v32 = vadd.f32 %v1363_v58, %v1230_v31  ;;  %v483_v37 = vadd.f32 %v1363_v58, %v1237_v35  ;;  %v170_v49 = vpop.f32.mrf.mxu1 }
  0xcb   :  { %v484_v29 = vadd.f32 %v1363_v58, %v1242_v42  ;;  %v485_v31 = vadd.f32 %v1363_v58, %v1248_v53  ;;  %v486_v35 = vadd.f32 %v1363_v58, %v1266_v3  ;;  %v327_v47 = vadd.f32 %v1240_v40, %v141_v17 }
  0xcc   :  { %v844_v38 = vpop.eup %843  ;;  %v424_v28 = vadd.f32 %v1330_v50, %v423_v23  ;;  %v800_v45 = vmul.f32 -1.442695, %v481_v25  ;;  %v801_v46 = vmul.f32 -1.442695, %v482_v32  ;;  %v1423_v53 = vsel %vm1333_vm6, %v1314_v36, %v413_v1  ;;  %vm1456_vm6 = vmor %vm380_vm11, %vm381_vm9 }
  0xcd   :  { %v1417_v41 = vadd.f32 1.0, %v844_v38  ;;  %v802_v24 = vmul.f32 -1.442695, %v483_v37  ;;  %v446_v36 = vand.u32 2147483648, %v1356_v5  ;;  %v803_v54 = vmul.f32 -1.442695, %v484_v29 }
  0xce   :  { %v428_v52 = vsel %vm1429_vm2, %v1330_v50, %v424_v28  ;;  %vm1442_vm4 = vcmp.eq.f32.partialorder %v399_v39, 8.507059e+37  ;;  %vm1447_vm5 = vcmp.eq.f32.partialorder %v444_v21, 8.507059e+37  ;;  %v804_v57 = vmul.f32 -1.442695, %v485_v31  ;;  %v197_v9 = vpop.f32.mrf.mxu2 }
  0xcf   :  { %v846_v40 = vpop.eup %845  ;;  %847 = vrcp.f32 %v1417_v41  ;;  %v488_v50 = vadd.f32 %v1363_v58, %v170_v49  ;;  %v805_v59 = vmul.f32 -1.442695, %v486_v35  ;;  %v799_v60 = vmul.f32 -1.442695, %v327_v47 }
  0xd0   :  { %v436_v55 = vmul.f32 %v846_v40, %v1356_v5  ;;  %849 = vpow2.f32 %v800_v45  ;;  %v393_v2 = vmul.f32 %v1312_v34, %v392_v20  ;;  %v383_v11 = vsel %vm1456_vm6, %v1283_v14, %v379_v51 }
  0xd1   :  { %851 = vpow2.f32 %v801_v46  ;;  %v316_v62 = vpop.f32.mrf.mxu0  ;;  %v447_v12 = vor.u32 1.1754944e-38, %v446_v36  ;;  %v807_v17 = vmul.f32 -1.442695, %v488_v50  ;;  %vm441_vm7 = vweird.f32 %v846_v40 }
  0xd2   :  { %v437_v4 = vsub.f32 1.0, %v436_v55  ;;  %853 = vpow2.f32 %v802_v24  ;;  %v317_v10 = vadd.f32 %v316_v62, %v255_v22  ;;  %v394_v61 = vadd.f32 %v1312_v34, %v393_v2  ;;  %vm442_vm9 = vmor %vm440_vm3, %vm441_vm7 }
  0xd3   :  { %855 = vpow2.f32 %v803_v54  ;;  %v433_v14 = vsel %vm1402_vm0, %v1361_v13, %v428_v52  ;;  %v388_v8 = vsel %vm1413_vm1, %v1322_v44, %v383_v11  ;;  %v459_v1 = vand.u32 2147483647, %v1417_v41 }
  0xd4   :  { %v438_v18 = vmul.f32 %v846_v40, %v437_v4  ;;  %857 = vpow2.f32 %v804_v57  ;;  %v1475_v33 = vperm.slane %v317_v10, 0  ;;  %v398_v63 = vsel %vm1471_vm8, %v1312_v34, %v394_v61 }
  0xd5   :  { %v1477_v22 = vpop.eup %847  ;;  %859 = vpow2.f32 %v805_v59  ;;  %v461_v32 = vand.u32 2147483648, %v1417_v41  ;;  %v403_v30 = vsel %vm1442_vm4, %v1366_v15, %v398_v63  ;;  %vm455_vm10 = vweird.f32 %v1417_v41 }
  0xd6   :  { %v850_v23 = vpop.eup %849  ;;  %v439_v25 = vadd.f32 %v846_v40, %v438_v18  ;;  %861 = vpow2.f32 %v799_v60  ;;  %v451_v13 = vmul.f32 %v1477_v22, %v1417_v41  ;;  %v654_v34 = vmul.f32 %v1475_v33, %v1389_v27 }
  0xd7   :  { %v852_v37 = vpop.eup %851  ;;  %v1495_v44 = vadd.f32 1.0, %v850_v23  ;;  %863 = vpow2.f32 %v807_v17  ;;  %v655_v5 = vmul.f32 %v1475_v33, %v388_v8  ;;  %v656_v27 = vmul.f32 %v1475_v33, %v403_v30  ;;  %v199_v30 = vpop.f32.mrf.mxu2 }
  0xd8   :  { %v854_v29 = vpop.eup %853  ;;  %v443_v38 = vsel %vm442_vm9, %v846_v40, %v439_v25  ;;  %v1499_v28 = vadd.f32 1.0, %v852_v37  ;;  %v657_v15 = vmul.f32 %v1475_v33, %v1423_v53  ;;  %v662_v46 = vadd.f32 %v654_v34, %v1272_v6 }
  0xd9   :  { %v856_v21 = vpop.eup %855  ;;  %v448_v31 = vsel %vm1447_vm5, %v447_v12, %v443_v38  ;;  %v1507_v35 = vadd.f32 1.0, %v854_v29  ;;  %865 = vrcp.f32 %v1495_v44  ;;  %v658_v3 = vmul.f32 %v1475_v33, %v433_v14 }
  0xda   :  { %v858_v42 = vpop.eup %857  ;;  %v1512_v45 = vadd.f32 1.0, %v856_v21  ;;  %867 = vrcp.f32 %v1499_v28  ;;  %vm1522_vm11 = vcmp.eq.f32.partialorder %v459_v1, 8.507059e+37  ;;  %v659_v53 = vmul.f32 %v1475_v33, %v448_v31 }
  0xdb   :  { %v860_v47 = vpop.eup %859  ;;  %v1518_v49 = vadd.f32 1.0, %v858_v42  ;;  %869 = vrcp.f32 %v1507_v35  ;;  %v487_v6 = vadd.f32 %v1363_v58, %v1319_v43  ;;  %v663_v54 = vadd.f32 %v655_v5, %v1275_v7 }
  0xdc   :  { %v862_v51 = vpop.eup %861  ;;  %v1526_v40 = vadd.f32 1.0, %v860_v47  ;;  %871 = vrcp.f32 %v1512_v45  ;;  %v452_v55 = vsub.f32 1.0, %v451_v13  ;;  %v664_v57 = vadd.f32 %v656_v27, %v1287_v16 }
  0xdd   :  { %v864_v52 = vpop.eup %863  ;;  %873 = vrcp.f32 %v1518_v49  ;;  %v1533_v36 = vadd.f32 1.0, %v862_v51  ;;  %v665_v50 = vadd.f32 %v657_v15, %v1294_v19  ;;  %v666_v43 = vadd.f32 %v658_v3, %v1327_v48 }
  0xde   :  { %875 = vrcp.f32 %v1526_v40  ;;  %v1537_v56 = vadd.f32 1.0, %v864_v52  ;;  %v453_v58 = vmul.f32 %v1477_v22, %v452_v55  ;;  %vm456_vm12 = vweird.f32 %v1477_v22 }
  0xdf   :  { %v1541_v59 = vpop.eup %865  ;;  %877 = vrcp.f32 %v1533_v36  ;;  %v667_v19 = vadd.f32 %v659_v53, %v1385_v26  ;;  %v462_v2 = vor.u32 1.1754944e-38, %v461_v32  ;;  %vm457_vm13 = vmor %vm455_vm10, %vm456_vm12  ;;  %v806_v26 = vmul.f32 -1.442695, %v487_v6 }
  0xe0   :  { %v1547_v7 = vpop.eup %867  ;;  %v522_v60 = vmul.f32 %v1541_v59, %v1495_v44  ;;  %879 = vrcp.f32 %v1537_v56  ;;  %v637_v16 = vand.u32 2147483648, %v1537_v56  ;;  %v454_v39 = vadd.f32 %v1477_v22, %v453_v58 }
  0xe1   :  { %v1554_v62 = vpop.eup %869  ;;  %v1558_v48 = vmul.f32 %v1547_v7, %v1499_v28  ;;  %881 = vtanh.f32 %v662_v46  ;;  %v651_v11 = vadd.f32 %v1262_v0, %v197_v9  ;;  %vm470_vm14 = vweird.f32 %v1533_v36 }
  0xe2   :  { %v1561_v4 = vpop.eup %871  ;;  %v1565_v10 = vmul.f32 %v1554_v62, %v1507_v35  ;;  %883 = vtanh.f32 %v663_v54  ;;  %v523_v17 = vsub.f32 1.0, %v522_v60  ;;  %v458_v18 = vsel %vm457_vm13, %v1477_v22, %v454_v39 }
  0xe3   :  { %v1570_v12 = vpop.eup %873  ;;  %v1574_v61 = vmul.f32 %v1561_v4, %v1512_v45  ;;  %885 = vtanh.f32 %v664_v57  ;;  %v1584_v14 = vor.u32 1.1754944e-38, %v637_v16  ;;  %v463_v8 = vsel %vm1522_vm11, %v462_v2, %v458_v18  ;;  %v1646_v2 = vld [vmem:[%s1806_s1] ss:$0 sm:$0xff]  ;;  %s954_s1 = smov [#allocation4]  }
  0xe4   :  { %v1578_v20 = vpop.eup %875  ;;  %v1582_v41 = vmul.f32 %v1570_v12, %v1518_v49  ;;  %887 = vtanh.f32 %v665_v50  ;;  %v538_v23 = vsub.f32 1.0, %v1558_v48  ;;  %vm631_vm15 = vweird.f32 %v1537_v56  ;;  %s1750_s26 = sshll.u32 %s954_s1, 4  ;;  %s741_s26 = int_to_ptr.vmem [resolvable:$true] %s1750_s26 }
  0xe5   :  { %v878_v63 = vpop.eup %877  ;;  %v1591_v22 = vmul.f32 %v1578_v20, %v1526_v40  ;;  %889 = vtanh.f32 %v666_v43  ;;  %v660_v25 = vmul.f32 %v1475_v33, %v463_v8  ;;  %v553_v32 = vsub.f32 1.0, %v1565_v10 }
  0xe6   :  { %v880_v1 = vpop.eup %879  ;;  %v568_v37 = vsub.f32 1.0, %v1574_v61  ;;  %v466_v13 = vmul.f32 %v878_v63, %v1533_v36  ;;  %891 = vtanh.f32 %v667_v19  ;;  %v583_v29 = vsub.f32 1.0, %v1582_v41 }
  0xe7   :  { %v1598_v34 = vpop.eup %881  ;;  %v627_v38 = vmul.f32 %v880_v1, %v1537_v56  ;;  %893 = vpow2.f32 %v806_v26  ;;  %vm471_vm0 = vweird.f32 %v878_v63  ;;  %v598_v21 = vsub.f32 1.0, %v1591_v22 }
  0xe8   :  { %v1602_v5 = vpop.eup %883  ;;  %v668_v31 = vadd.f32 %v660_v25, %v651_v11  ;;  %v467_v27 = vsub.f32 1.0, %v466_v13  ;;  %v474_v42 = vand.u32 2147483647, %v1533_v36  ;;  %v476_v47 = vand.u32 2147483648, %v1533_v36  ;;  %vm1627_vm4 = vmor %vm470_vm14, %vm471_vm0 }
  0xe9   :  { %v1606_v15 = vpop.eup %885  ;;  %v628_v46 = vsub.f32 1.0, %v627_v38  ;;  %v635_v3 = vand.u32 2147483647, %v1537_v56  ;;  %v524_v24 = vmul.f32 %v1541_v59, %v523_v17  ;;  %vm632_vm1 = vweird.f32 %v880_v1 }
  0xea   :  { %v1611_v51 = vpop.eup %887  ;;  %895 = vtanh.f32 %v668_v31  ;;  %v468_v53 = vmul.f32 %v878_v63, %v467_v27  ;;  %v652_v6 = vadd.f32 %v1262_v0, %v199_v30  ;;  %vm1616_vm2 = vcmp.eq.f32.partialorder %v474_v42, 8.507059e+37  ;;  %vm1651_vm8 = vmor %vm631_vm15, %vm632_vm1 }
  0xeb   :  { %v1614_v52 = vpop.eup %889  ;;  %v629_v54 = vmul.f32 %v880_v1, %v628_v46  ;;  %v525_v55 = vadd.f32 %v1541_v59, %v524_v24  ;;  %vm526_vm3 = vweird.f32 %v1495_v44  ;;  %vm527_vm5 = vweird.f32 %v1541_v59 }
  0xec   :  { %v1622_v57 = vpop.eup %891  ;;  %v469_v50 = vadd.f32 %v878_v63, %v468_v53  ;;  %v530_v0 = vand.u32 2147483647, %v1495_v44  ;;  %v532_v58 = vand.u32 2147483648, %v1495_v44  ;;  %v477_v16 = vor.u32 1.1754944e-38, %v476_v47  ;;  %vm1638_vm7 = vmor %vm526_vm3, %vm527_vm5 }
  0xed   :  { %v894_v60 = vpop.eup %893  ;;  %v630_v19 = vadd.f32 %v880_v1, %v629_v54  ;;  %vm1634_vm6 = vcmp.eq.f32.partialorder %v635_v3, 8.507059e+37  ;;  %v539_v36 = vmul.f32 %v1547_v7, %v538_v23  ;;  %v529_v17 = vsel %vm1638_vm7, %v1541_v59, %v525_v55 }
  0xee   :  { %v1655_v26 = vadd.f32 1.0, %v894_v60  ;;  %v473_v11 = vsel %vm1627_vm4, %v878_v63, %v469_v50  ;;  %vm542_vm9 = vweird.f32 %v1547_v7  ;;  %v533_v8 = vor.u32 1.1754944e-38, %v532_v58 }
  0xef   :  { %v478_v18 = vsel %vm1616_vm2, %v477_v16, %v473_v11  ;;  %v634_v56 = vsel %vm1651_vm8, %v880_v1, %v630_v19  ;;  %v540_v23 = vadd.f32 %v1547_v7, %v539_v36  ;;  %vm531_vm10 = vcmp.eq.f32.partialorder %v530_v0, 8.507059e+37 }
  0xf0   :  { %v1668_v25 = vpop.eup %895  ;;  %897 = vrcp.f32 %v1655_v26  ;;  %v622_v63 = vand.u32 2147483648, %v1655_v26  ;;  %vm541_vm11 = vweird.f32 %v1499_v28  ;;  %v620_v59 = vand.u32 2147483647, %v1655_v26 }
  0xf1   :  { %v639_v13 = vsel %vm1634_vm6, %v1584_v14, %v634_v56  ;;  %v661_v1 = vmul.f32 %v1475_v33, %v478_v18  ;;  %v1678_v38 = vsel %vm531_vm10, %v533_v8, %v529_v17  ;;  %vm1680_vm12 = vmor %vm541_vm11, %vm542_vm9  ;;  %v545_v14 = vand.u32 2147483647, %v1499_v28 }
  0xf2   :  { %v1684_v31 = vor.u32 1.1754944e-38, %v622_v63  ;;  %v685_v27 = vsub.f32 1.0, %v639_v13  ;;  %v704_v42 = vmul.f32 %v1646_v2, %v639_v13  ;;  %v544_v46 = vsel %vm1680_vm12, %v1547_v7, %v540_v23 }
  0xf3   :  { %v669_v47 = vadd.f32 %v661_v1, %v652_v6  ;;  %v547_v33 = vand.u32 2147483648, %v1499_v28  ;;  %v554_v3 = vmul.f32 %v1554_v62, %v553_v32  ;;  %vm556_vm13 = vweird.f32 %v1507_v35 }
  0xf4   :  { %vm557_vm14 = vweird.f32 %v1554_v62  ;;  %v560_v24 = vand.u32 2147483647, %v1507_v35  ;;  %v562_v53 = vand.u32 2147483648, %v1507_v35  ;;  %vm616_vm15 = vweird.f32 %v1655_v26 }
  0xf5   :  { %899 = vtanh.f32 %v669_v47  ;;  %vm546_vm0 = vcmp.eq.f32.partialorder %v545_v14, 8.507059e+37  ;;  %v548_v7 = vor.u32 1.1754944e-38, %v547_v33  ;;  %v555_v6 = vadd.f32 %v1554_v62, %v554_v3  ;;  %vm558_vm1 = vmor %vm556_vm13, %vm557_vm14 }
  0xf6   :  { %v898_v28 = vpop.eup %897  ;;  %vm561_vm2 = vcmp.eq.f32.partialorder %v560_v24, 8.507059e+37  ;;  %v563_v10 = vor.u32 1.1754944e-38, %v562_v53  ;;  %v569_v32 = vmul.f32 %v1561_v4, %v568_v37  ;;  %vm571_vm3 = vweird.f32 %v1512_v45 }
  0xf7   :  { %v612_v54 = vmul.f32 %v898_v28, %v1655_v26  ;;  %vm617_vm4 = vweird.f32 %v898_v28  ;;  %vm1706_vm5 = vcmp.eq.f32.partialorder %v620_v59, 8.507059e+37  ;;  %v1710_v9 = vsel %vm546_vm0, %v548_v7, %v544_v46 }
  0xf8   :  { %v559_v55 = vsel %vm558_vm1, %v1554_v62, %v555_v6  ;;  %v570_v43 = vadd.f32 %v1561_v4, %v569_v32  ;;  %vm572_vm6 = vweird.f32 %v1561_v4  ;;  %v575_v61 = vand.u32 2147483647, %v1512_v45  ;;  %vm618_vm14 = vmor %vm616_vm15, %vm617_vm4 }
  0xf9   :  { %v1713_v50 = vsel %vm561_vm2, %v563_v10, %v559_v55  ;;  %v613_v37 = vsub.f32 1.0, %v612_v54  ;;  %vm1718_vm7 = vmor %vm571_vm3, %vm572_vm6  ;;  %v577_v58 = vand.u32 2147483648, %v1512_v45  ;;  %v584_v60 = vmul.f32 %v1570_v12, %v583_v29 }
  0xfa   :  { %vm586_vm8 = vweird.f32 %v1518_v49  ;;  %v574_v62 = vsel %vm1718_vm7, %v1561_v4, %v570_v43  ;;  %vm1730_vm9 = vcmp.eq.f32.partialorder %v575_v61, 8.507059e+37  ;;  %vm587_vm10 = vweird.f32 %v1570_v12 }
  0xfb   :  { %v590_v19 = vand.u32 2147483647, %v1518_v49  ;;  %v900_v48 = vpop.eup %899  ;;  %v614_v45 = vmul.f32 %v898_v28, %v613_v37  ;;  %v578_v39 = vor.u32 1.1754944e-38, %v577_v58  ;;  %v585_v41 = vadd.f32 %v1570_v12, %v584_v60  ;;  %vm1738_vm11 = vmor %vm586_vm8, %vm587_vm10 }
  0xfc   :  { %v592_v29 = vand.u32 2147483648, %v1518_v49  ;;  %v693_v36 = vmul.f32 %v900_v48, %v685_v27  ;;  %v599_v11 = vmul.f32 %v1578_v20, %v598_v21  ;;  %vm601_vm13 = vweird.f32 %v1526_v40 }
  0xfd   :  { %vm1742_vm12 = vcmp.eq.f32.partialorder %v590_v19, 8.507059e+37  ;;  %v615_v49 = vadd.f32 %v898_v28, %v614_v45  ;;  %v579_v17 = vsel %vm1730_vm9, %v578_v39, %v574_v62  ;;  %v589_v22 = vsel %vm1738_vm11, %v1570_v12, %v585_v41 }
  0xfe   :  { %v593_v18 = vor.u32 1.1754944e-38, %v592_v29  ;;  %v712_v21 = vadd.f32 %v704_v42, %v693_v36  ;;  %v600_v56 = vadd.f32 %v1578_v20, %v599_v11  ;;  %vm602_vm0 = vweird.f32 %v1578_v20 }
  0xff   :  { %v605_v8 = vand.u32 2147483647, %v1526_v40  ;;  %v619_v23 = vsel %vm618_vm14, %v898_v28, %v615_v49  ;;  %vm1770_vm1 = vmor %vm601_vm13, %vm602_vm0  ;;  %v607_v26 = vand.u32 2147483648, %v1526_v40  ;;  %v678_v59 = vsub.f32 1.0, %v1678_v38 }
 0x100   :  { %v594_v63 = vsel %vm1742_vm12, %v593_v18, %v589_v22  ;;  %v624_v13 = vsel %vm1706_vm5, %v1684_v31, %v619_v23  ;;  %720 = vst [vmem:[#allocation2 + $0x38] sm:$0xff] %v712_v21  ;;  %v604_v1 = vsel %vm1770_vm1, %v1578_v20, %v600_v56  ;;  %v679_v30 = vsub.f32 1.0, %v1710_v9 }
 0x101   :  { %vm606_vm15 = vcmp.eq.f32.partialorder %v605_v8, 8.507059e+37  ;;  %v684_v27 = vsub.f32 1.0, %v624_v13  ;;  %v703_v42 = vmul.f32 %v1646_v2, %v624_v13  ;;  %721 = vst [vmem:[#allocation4 - $0x7] sm:$0x80] %v712_v21  ;;  %v608_v40 = vor.u32 1.1754944e-38, %v607_v26 }
 0x102   :  { %v680_v46 = vsub.f32 1.0, %v1713_v50  ;;  %v681_v47 = vsub.f32 1.0, %v579_v17  ;;  %v682_v14 = vsub.f32 1.0, %v594_v63  ;;  %v686_v33 = vmul.f32 %v1598_v34, %v678_v59  ;;  %745 = dma.vmem_to_hbm [thread:$0]  %s741_s26, 16, %s743_s29, [#allocation5]  }
 0x103   :  { %v687_v31 = vmul.f32 %v1602_v5, %v679_v30  ;;  %v692_v3 = vmul.f32 %v1668_v25, %v684_v27  ;;  %v609_v20 = vsel %vm606_vm15, %v608_v40, %v604_v1  ;;  %v697_v53 = vmul.f32 %v1646_v2, %v1678_v38 }
 0x104   :  { %v688_v24 = vmul.f32 %v1606_v15, %v680_v46  ;;  %v683_v7 = vsub.f32 1.0, %v609_v20  ;;  %v689_v6 = vmul.f32 %v1611_v51, %v681_v47  ;;  %v690_v28 = vmul.f32 %v1614_v52, %v682_v14 }
 0x105   :  { %v698_v10 = vmul.f32 %v1646_v2, %v1710_v9  ;;  %v711_v34 = vadd.f32 %v703_v42, %v692_v3  ;;  %v699_v5 = vmul.f32 %v1646_v2, %v1713_v50  ;;  %v700_v25 = vmul.f32 %v1646_v2, %v579_v17 }
 0x106   :  { %v691_v32 = vmul.f32 %v1622_v57, %v683_v7  ;;  %v701_v15 = vmul.f32 %v1646_v2, %v594_v63  ;;  %v705_v54 = vadd.f32 %v697_v53, %v686_v33  ;;  %v702_v51 = vmul.f32 %v1646_v2, %v609_v20 }
 0x107   :  { %v706_v38 = vadd.f32 %v698_v10, %v687_v31  ;;  %719 = vst [vmem:[#allocation2 + $0x30] sm:$0xff] %v711_v34  ;;  %v707_v35 = vadd.f32 %v699_v5, %v688_v24  ;;  %v708_v52 = vadd.f32 %v700_v25, %v689_v6 }
 0x108   :  { %v709_v9 = vadd.f32 %v701_v15, %v690_v28  ;;  %713 = vst [vmem:[#allocation2] sm:$0xff] %v705_v54  ;;  %v710_v55 = vadd.f32 %v702_v51, %v691_v32 }
 0x109   :  { %714 = vst [vmem:[#allocation2 + $0x8] sm:$0xff] %v706_v38 }
 0x10a   :  { %715 = vst [vmem:[#allocation2 + $0x10] sm:$0xff] %v707_v35 }
 0x10b   :  { %716 = vst [vmem:[#allocation2 + $0x18] sm:$0xff] %v708_v52 }
 0x10c   :  { %717 = vst [vmem:[#allocation2 + $0x20] sm:$0xff] %v709_v9 }
 0x10d   :  { %718 = vst [vmem:[#allocation2 + $0x28] sm:$0xff] %v710_v55 }
 0x10e   :  { %734 = dma.vmem_to_hbm [thread:$0]  %s727_s30, 1024, %s729_s10, [#allocation3], %s956_s2, %s956_s2, %s957_s11  }
 0x10f   :  { %949 = dma.done.wait [#allocation3], 1024  }
 0x110   :  { %950 = vsyncadd [#allocation3], 4294966272 }
 0x111   :  { %951 = dma.done.wait [#allocation5], 16  }
 0x112   :  { %952 = vsyncadd [#allocation5], 4294967280 }
 0x113   :  { %754 = vsyncpa [#allocation3], 1 }
 0x114   :  { %755 = vsyncpa [#allocation5], 1 }

</bundles_post_ra>
